<compile_context>
chip_gen: v7x
topology: tpu7x:2x2x1
jax: 0.10.0
libtpu: 0.0.40
codegen_flags: <defaults>
</compile_context>

<pallas_src>
import jax
import jax.numpy as jnp
from jax.experimental import pallas as pl
from jax.experimental.pallas import tpu as pltpu


def _copy_kernel(x_ref, o_ref):
    # Pure pass-through: copy the current VMEM tile to the output tile.
    o_ref[...] = x_ref[...]


def _identity_copy_2d(x2d: jax.Array) -> jax.Array:
    """Tiled, pipelined, lane-dense copy of a 2D (rows, lanes) slab."""
    M, LANE = x2d.shape
    itemsize = jnp.dtype(x2d.dtype).itemsize

    # Target ~2 MiB per block: (in + out) x double-buffering ~ 8 MiB,
    # comfortably inside the smallest scoped-VMEM default (16 MiB on v5e).
    target_rows = max(8, (2 * 1024 * 1024) // (LANE * itemsize))
    target_rows = (target_rows // 8) * 8          # keep sublane-aligned
    tm = M if M <= target_rows else target_rows   # full extent OK if small

    grid = (pl.cdiv(M, tm),)
    nbytes = M * LANE * itemsize

    return pl.pallas_call(
        _copy_kernel,
        out_shape=jax.ShapeDtypeStruct((M, LANE), x2d.dtype),
        grid=grid,
        in_specs=[pl.BlockSpec((tm, LANE), lambda i: (i, 0))],
        out_specs=pl.BlockSpec((tm, LANE), lambda i: (i, 0)),
        input_output_aliases={0: 0},
        compiler_params=pltpu.CompilerParams(
            dimension_semantics=("parallel",)),
        cost_estimate=pl.CostEstimate(
            flops=0, transcendentals=0, bytes_accessed=2 * nbytes),
    )(x2d)


def identity(x: jax.Array) -> jax.Array:
    """Pallas implementation of nn.Identity: returns `x` unchanged."""
    total = x.size
    if total == 0:
        return x

    if total % 128 == 0:
        # Lane-dense slab: 1024-wide if possible, else 128-wide.
        lane = 1024 if total % 1024 == 0 else 128
        y2d = _identity_copy_2d(x.reshape(total // lane, lane))
        return y2d.reshape(x.shape)

    # Fallback for element counts not divisible by 128: single full-array
    # block (tiny tensors only; tiling constraint satisfied via full extents).
    return pl.pallas_call(
        _copy_kernel,
        out_shape=jax.ShapeDtypeStruct(x.shape, x.dtype),
        in_specs=[pl.BlockSpec(x.shape, lambda: (0,) * x.ndim)],
        out_specs=pl.BlockSpec(x.shape, lambda: (0,) * x.ndim),
        input_output_aliases={0: 0},
    )(x)


if __name__ == "__main__":
    key = jax.random.PRNGKey(0)
    x = jax.random.normal(key, (2, 4, 16, 16), dtype=jnp.float32)

    identity_fn = jax.jit(identity)
    y = identity_fn(x)
    jax.block_until_ready(y)

    assert y.shape == x.shape
    assert y.dtype == x.dtype
    assert jnp.array_equal(y, x)

    print("KERNEL_OK")
</pallas_src>

<mosaic_0001>
module attributes {stable_mosaic.version = 11 : i64} {
  func.func @_copy_kernel(%arg0: i32, %arg1: memref<2x1024xf32, #tpu.memory_space<vmem>>, %arg2: memref<2x1024xf32, #tpu.memory_space<vmem>>) attributes {dimension_semantics = [#tpu.dimension_semantics<parallel>], iteration_bounds = array<i64: 1>, scalar_prefetch = 0 : i64, scratch_operands = 0 : i64, tpu.core_type = #tpu.core_type<tc>, window_params = [{transform_indices = @transform_0, window_bounds = array<i64: 2, 1024>}, {transform_indices = @transform_1, window_bounds = array<i64: 2, 1024>}]} {
    %c0 = arith.constant 0 : index
    %c0_0 = arith.constant 0 : index
    %0 = vector.load %arg1[%c0, %c0_0] : memref<2x1024xf32, #tpu.memory_space<vmem>>, vector<2x1024xf32>
    %c0_1 = arith.constant 0 : index
    %c0_2 = arith.constant 0 : index
    %1 = vector.load %arg2[%c0_1, %c0_2] : memref<2x1024xf32, #tpu.memory_space<vmem>>, vector<2x1024xf32>
    tpu.vector_store %arg2[%c0_1, %c0_2], %0 {strides = array<i32>} : memref<2x1024xf32, #tpu.memory_space<vmem>>, vector<2x1024xf32>,
    return
  }
  func.func @transform_0(%arg0: i32) -> (i32, i32) {
    %c0_i32 = arith.constant 0 : i32
    %c0_i32_0 = arith.constant 0 : i32
    return %arg0, %c0_i32 : i32, i32
  }
  func.func @transform_1(%arg0: i32) -> (i32, i32) {
    %c0_i32 = arith.constant 0 : i32
    %c0_i32_0 = arith.constant 0 : i32
    return %arg0, %c0_i32 : i32, i32
  }
}

</mosaic_0001>

<bundles_post_ra>
// kernel: identity.1
= control target key start
LH: loop header
LB: loop body
LE: loop exit
PB: predicated region body
PF: predicated region fallthrough
CT: control target
= control target key end

     0   :  { %s38_s0 = inlined_call_operand.vmem [shape: f32[2,1024], index: 0, kind: input, shape index: {}, may-alias: {0,1}]   ;;  %s39_s1 = inlined_call_operand.vmem [shape: f32[2,1024], index: 1, kind: output, shape index: {}, may-alias: {0,1}]  }
   0x1   :  { %v8_v0 = vld [vmem:[%s38_s0] sm:$0xff]  ;;  %v9_v1 = vld [vmem:[%s38_s0 + $0x8] sm:$0xff] }
   0x2   :  { %10 = vst [vmem:[%s39_s1] sm:$0xff] %v8_v0  ;;  %11 = vst [vmem:[%s39_s1 + $0x8] sm:$0xff] %v9_v1 }

</bundles_post_ra>
